<compile_context>
chip_gen: v7x
topology: tpu7x:2x2x1
jax: 0.10.0
libtpu: 0.0.40
codegen_flags: <defaults>
</compile_context>

<pallas_src>
import functools

import jax
import jax.numpy as jnp
from jax.experimental import pallas as pl
from jax.experimental.pallas import tpu as pltpu

IN_FEATURES = 1536
OUT_FEATURES = 128
_DEFAULT_BLOCK_B = 512  # bf16 X tile = 1.5 MiB; x2 buffers + W + out stays ~5 MiB


def _linear_kernel(x_ref, w_ref, b_ref, o_ref):
    # x_ref: (TB, 1536)  w_ref: (1536, 128)  b_ref: (1, 128) f32  o_ref: (TB, 128)
    acc = jnp.dot(x_ref[...], w_ref[...], preferred_element_type=jnp.float32)
    o_ref[...] = (acc + b_ref[...]).astype(o_ref.dtype)


@functools.partial(jax.jit, static_argnames=("block_b", "compute_dtype"))
def joint_model_forward(x, w, b, *, block_b=_DEFAULT_BLOCK_B,
                        compute_dtype=jnp.bfloat16):
    """Forward pass of JointModel: y = x @ w + b.

    x: (B, 1536), w: (1536, 128), b: (128,). Returns (B, 128) in x.dtype.
    Pass compute_dtype=jnp.float32 for exact f32 matmul semantics.
    """
    B = x.shape[0]
    out_dtype = x.dtype

    xc = x.astype(compute_dtype)
    wc = w.astype(compute_dtype)
    b2 = b.astype(jnp.float32).reshape(1, OUT_FEATURES)

    # Batch tile: the whole batch if small (block == full dim is always legal),
    # otherwise block_b, which must respect sublane packing (16 bf16 / 8 f32).
    sublane = 16 if compute_dtype == jnp.bfloat16 else 8
    if B <= block_b:
        tb = B
    else:
        assert block_b % sublane == 0, "block_b must be a multiple of sublane pack"
        tb = block_b
    grid = (pl.cdiv(B, tb),)

    itemsize = jnp.dtype(compute_dtype).itemsize
    cost = pl.CostEstimate(
        flops=2 * B * IN_FEATURES * OUT_FEATURES,
        transcendentals=0,
        bytes_accessed=(B * IN_FEATURES * itemsize                # X
                        + IN_FEATURES * OUT_FEATURES * itemsize   # W (fetched once)
                        + OUT_FEATURES * 4                        # bias
                        + B * OUT_FEATURES * jnp.dtype(out_dtype).itemsize),  # Y
    )

    return pl.pallas_call(
        _linear_kernel,
        out_shape=jax.ShapeDtypeStruct((B, OUT_FEATURES), out_dtype),
        grid_spec=pltpu.PrefetchScalarGridSpec(
            num_scalar_prefetch=0,
            grid=grid,
            in_specs=[
                # X: streamed per batch tile (double-buffered by the pipeline).
                pl.BlockSpec((tb, IN_FEATURES), lambda i: (i, 0)),
                # W and bias: constant block index -> DMA'd once, then revisited.
                pl.BlockSpec((IN_FEATURES, OUT_FEATURES), lambda i: (0, 0)),
                pl.BlockSpec((1, OUT_FEATURES), lambda i: (0, 0)),
            ],
            out_specs=pl.BlockSpec((tb, OUT_FEATURES), lambda i: (i, 0)),
        ),
        compiler_params=pltpu.CompilerParams(
            # Batch tiles are independent -> shard across TCs (v7x megacore).
            dimension_semantics=("parallel",),
            # Explicit scoped-VMEM budget; safe on v5e/v6e (128 MiB) and v7x (64 MiB).
            vmem_limit_bytes=32 * 1024 * 1024,
        ),
        cost_estimate=cost,
    )(xc, wc, b2)


if __name__ == "__main__":
    key = jax.random.PRNGKey(0)
    k_x, k_w, k_b = jax.random.split(key, 3)

    # Deterministic init mimicking nn.Linear's uniform(-1/sqrt(in), 1/sqrt(in)).
    bound = 1.0 / jnp.sqrt(jnp.float32(IN_FEATURES))
    # PyTorch stores weight as (out, in); we keep the transposed (in, out) layout.
    w = jax.random.uniform(k_w, (IN_FEATURES, OUT_FEATURES), jnp.float32, -bound, bound)
    b = jax.random.uniform(k_b, (OUT_FEATURES,), jnp.float32, -bound, bound)

    B = 64                       # small batch; block_b=16 -> 4-step pipelined grid
    x = jax.random.normal(k_x, (B, IN_FEATURES), jnp.float32)

    y = joint_model_forward(x, w, b, block_b=16)
    jax.block_until_ready(y)
    assert y.shape == (B, OUT_FEATURES)
    assert y.dtype == x.dtype

    # Reference using the same bf16-rounded inputs / f32 accumulation as the kernel.
    y_ref = jnp.dot(x.astype(jnp.bfloat16).astype(jnp.float32),
                    w.astype(jnp.bfloat16).astype(jnp.float32)) + b
    assert jnp.allclose(y, y_ref, atol=1e-2, rtol=1e-2), float(
        jnp.max(jnp.abs(y - y_ref)))

    # Sanity against the exact f32 linear (difference = bf16 input rounding only).
    y_f32 = jnp.dot(x, w, precision=jax.lax.Precision.HIGHEST) + b
    assert float(jnp.max(jnp.abs(y - y_f32))) < 5e-2

    print("KERNEL_OK")
</pallas_src>

<mosaic_0001>
module attributes {stable_mosaic.version = 11 : i64} {
  func.func @_linear_kernel(%arg0: i32, %arg1: memref<16x1536xbf16, #tpu.memory_space<vmem>>, %arg2: memref<1536x128xbf16, #tpu.memory_space<vmem>>, %arg3: memref<1x128xf32, #tpu.memory_space<vmem>>, %arg4: memref<16x128xf32, #tpu.memory_space<vmem>>) attributes {dimension_semantics = [#tpu.dimension_semantics<parallel>], iteration_bounds = array<i64: 4>, scalar_prefetch = 0 : i64, scratch_operands = 0 : i64, tpu.core_type = #tpu.core_type<tc>, window_params = [{transform_indices = @transform_0, window_bounds = array<i64: 16, 1536>}, {pipeline_mode = #tpu.pipeline_mode<synchronous>, transform_indices = @transform_1, window_bounds = array<i64: 1536, 128>}, {pipeline_mode = #tpu.pipeline_mode<synchronous>, transform_indices = @transform_2, window_bounds = array<i64: 1, 128>}, {transform_indices = @transform_3, window_bounds = array<i64: 16, 128>}]} {
    %c0 = arith.constant 0 : index
    %c0_0 = arith.constant 0 : index
    %0 = vector.load %arg1[%c0, %c0_0] : memref<16x1536xbf16, #tpu.memory_space<vmem>>, vector<16x1536xbf16>
    %c0_1 = arith.constant 0 : index
    %c0_2 = arith.constant 0 : index
    %1 = vector.load %arg2[%c0_1, %c0_2] : memref<1536x128xbf16, #tpu.memory_space<vmem>>, vector<1536x128xbf16>
    %cst = arith.constant dense<0.000000e+00> : vector<16x128xf32>
    %2 = tpu.matmul %0, %1, %cst {dimension_numbers = #tpu.dot_dimension_numbers<[1], [0], [0], [1], [0, 0, 1, 1], [], []>} : vector<16x1536xbf16>, vector<1536x128xbf16>, vector<16x128xf32> -> vector<16x128xf32>
    %c0_3 = arith.constant 0 : index
    %c0_4 = arith.constant 0 : index
    %3 = vector.load %arg3[%c0_3, %c0_4] : memref<1x128xf32, #tpu.memory_space<vmem>>, vector<1x128xf32>
    %4 = vector.broadcast %3 : vector<1x128xf32> to vector<16x128xf32>
    %5 = arith.addf %2, %4 : vector<16x128xf32>
    %c0_5 = arith.constant 0 : index
    %c0_6 = arith.constant 0 : index
    %6 = vector.load %arg4[%c0_5, %c0_6] : memref<16x128xf32, #tpu.memory_space<vmem>>, vector<16x128xf32>
    tpu.vector_store %arg4[%c0_5, %c0_6], %5 {strides = array<i32>} : memref<16x128xf32, #tpu.memory_space<vmem>>, vector<16x128xf32>,
    return
  }
  func.func @transform_0(%arg0: i32) -> (i32, i32) {
    %c0_i32 = arith.constant 0 : i32
    %c0_i32_0 = arith.constant 0 : i32
    return %arg0, %c0_i32 : i32, i32
  }
  func.func @transform_1(%arg0: i32) -> (i32, i32) {
    %c0_i32 = arith.constant 0 : i32
    %c0_i32_0 = arith.constant 0 : i32
    %c0_i32_1 = arith.constant 0 : i32
    return %c0_i32, %c0_i32_0 : i32, i32
  }
  func.func @transform_2(%arg0: i32) -> (i32, i32) {
    %c0_i32 = arith.constant 0 : i32
    %c0_i32_0 = arith.constant 0 : i32
    %c0_i32_1 = arith.constant 0 : i32
    return %c0_i32, %c0_i32_0 : i32, i32
  }
  func.func @transform_3(%arg0: i32) -> (i32, i32) {
    %c0_i32 = arith.constant 0 : i32
    %c0_i32_0 = arith.constant 0 : i32
    return %arg0, %c0_i32 : i32, i32
  }
}

</mosaic_0001>

<bundles_post_ra>
// kernel: joint_model_forward.1
= control target key start
LH: loop header
LB: loop body
LE: loop exit
PB: predicated region body
PF: predicated region fallthrough
CT: control target
= control target key end

     0   :  { %8 = vsyncpa [#allocation3], 0  ;;  %s2251_s0 = inlined_call_operand.vmem [shape: bf16[64,1536], index: 0, kind: input, shape index: {}]   ;;  %s2252_s1 = inlined_call_operand.vmem [shape: bf16[1536,128], index: 1, kind: input, shape index: {}]   ;;  %s2253_s2 = inlined_call_operand.vmem [shape: f32[1,128], index: 2, kind: input, shape index: {}]   ;;  %s2254_s3 = inlined_call_operand.hbm [shape: f32[64,128], index: 3, kind: output, shape index: {}]  }
   0x1   :  { %10 = vsyncpa [#allocation3 + $0x1], 0  ;;  %s1844_s12 = smov 0   ;;  %s1846_s13 = smov 0  }
   0x2   :  { %s1848_s14 = smov 0   ;;  %s1850_s15 = smov 0  }
   0x3 LB: > { %s1865_s16 = sadd.s32 4294967295, %s1819_s15   ;;  %s1347_s17 = sadd.s32 4294967294, %s1819_s15   ;;  %s1819_s15 = sphi %s1850_s15, %s2260_s15   ;;  %s1815_s14 = sphi %s1848_s14, %s2259_s14   ;;  %s1811_s13 = sphi %s1846_s13, %s2258_s13   ;;  %s1807_s12 = sphi %s1844_s12, %s2257_s12  }
   0x4   : > { %s1869_s18 = sadd.s32 1, %s1819_s15   ;;  %s91_s19 = sadd.s32 1, %s1815_s14 }
   0x5   : > { %s88_s20 = ssub.s32 %s1819_s15, %s1869_s18  ;;  %p101_p0 = scmp.ne.s32.totalorder %s1815_s14, %s1811_s13 }
   0x6   : > { %p89_p1 = scmp.eq.s32.totalorder %s88_s20, 0  ;;  %p102_p2 = scmp.eq.s32.totalorder %s1865_s16, 3 }
   0x7   : > { %p107_p3 = scmp.ne.s32.totalorder %s1811_s13, %s1807_s12  ;;  %p108_p4 = scmp.eq.s32.totalorder %s1347_s17, 3 }
   0x8   : > { %s1880_s21 = scalar_select %p89_p1, %s1815_s14, %s91_s19  }
   0x9   : > { %p1882_p5 = por %p102_p2, %p101_p0  ;;  %p1886_p6 = por %p108_p4, %p107_p3 }
   0xa   : > { %p1350_p7 = scmp.ge.s32.totalorder %s1819_s15, 1  ;;  %p142_p8 = scmp.lt.s32.totalorder %s1819_s15, 5 }
   0xc   : > { %p143_p9 = pnand %p1350_p7, %p142_p8 }
   0xd   : > { %v1643_v0 = vld [vmem:[%s2252_s1 + $0x40] sm:$0xff] (!%p143_p9)   ;;  %v1647_v4 = vld [vmem:[%s2252_s1 + $0x48] sm:$0xff] (!%p143_p9)   ;;  %v1651_v8 = vld [vmem:[%s2252_s1 + $0x50] sm:$0xff] (!%p143_p9)   ;;  %s1352_s9 = sshll.u32 (!%p143_p9), %s1865_s16, 1  ;;  %s1468_s10 = sshll.u32 (!%p143_p9), %s1865_s16, 8 }
   0xe   : > { %146 = sbr.rel (%p143_p9) target bundleno = 347 (0x15b), region = 32  ;;  %v1644_v1 = vld [vmem:[%s2252_s1 + $0xc0] sm:$0xff] (!%p143_p9)   ;;  %1469 = vmatprep.subr.bf16.mxu0 (!%p143_p9), %v1643_v0  ;;  %v1648_v5 = vld [vmem:[%s2252_s1 + $0xc8] sm:$0xff] (!%p143_p9)   ;;  %v1652_v9 = vld [vmem:[%s2252_s1 + $0xd0] sm:$0xff] (!%p143_p9)   ;;  %p168_p10 = scmp.lt.s32.totalorder (!%p143_p9), %s1352_s9, 7 }
   0xf   : > { %v1645_v2 = vld [vmem:[%s2252_s1] sm:$0xff] (!%p143_p9)   ;;  %1491 = vmatprep.subr.bf16.mxu1 (!%p143_p9), %v1644_v1  ;;  %v1649_v6 = vld [vmem:[%s2252_s1 + $0x8] sm:$0xff] (!%p143_p9)   ;;  %v1653_v10 = vld [vmem:[%s2252_s1 + $0x10] sm:$0xff] (!%p143_p9)   ;;  %s2208_s19 = scalar_lea.hbm (!%p143_p9), %s2254_s3, %s1468_s10  ;;  %s1821_s16 = smov (!%p143_p9), [#allocation2]  }
  0x10   : > { %v1646_v3 = vld [vmem:[%s2252_s1 + $0x80] sm:$0xff] (!%p143_p9)   ;;  %1470 = vmatpush3.bf16.msra.mxu0 (!%p143_p9), %v1645_v2  ;;  %v1650_v7 = vld [vmem:[%s2252_s1 + $0x88] sm:$0xff] (!%p143_p9)   ;;  %v1654_v11 = vld [vmem:[%s2252_s1 + $0x90] sm:$0xff] (!%p143_p9)   ;;  %s1761_s25 = sshll.u32 (!%p143_p9), %s1821_s16, 4  ;;  %s1762_s25 = int_to_ptr.vmem [resolvable:$false] %s1761_s25 }
  0x11   : > { %1492 = vmatpush3.bf16.msra.mxu1 (!%p143_p9), %v1646_v3  ;;  %1471 = vmatprep.subr.bf16.mxu0 (!%p143_p9), %v1647_v4  ;;  %v1655_v12 = vld [vmem:[%s2252_s1 + $0x58] sm:$0xff] (!%p143_p9)   ;;  %v1659_v16 = vld [vmem:[%s2252_s1 + $0x60] sm:$0xff] (!%p143_p9)   ;;  %v1663_v20 = vld [vmem:[%s2252_s1 + $0x68] sm:$0xff] (!%p143_p9)   ;;  %s1763_s26 = scalar_lea.vmem (!%p143_p9), %s1762_s25, 512 }
  0x12   : > { %1493 = vmatprep.subr.bf16.mxu1 (!%p143_p9), %v1648_v5  ;;  %v1656_v13 = vld [vmem:[%s2252_s1 + $0xd8] sm:$0xff] (!%p143_p9)   ;;  %v1660_v17 = vld [vmem:[%s2252_s1 + $0xe0] sm:$0xff] (!%p143_p9)   ;;  %v1664_v21 = vld [vmem:[%s2252_s1 + $0xe8] sm:$0xff] (!%p143_p9)  }
  0x13   : > { %v1657_v14 = vld [vmem:[%s2252_s1 + $0x18] sm:$0xff] (!%p143_p9)   ;;  %v1661_v18 = vld [vmem:[%s2252_s1 + $0x20] sm:$0xff] (!%p143_p9)   ;;  %v1665_v22 = vld [vmem:[%s2252_s1 + $0x28] sm:$0xff] (!%p143_p9)  }
  0x14   : > { %1472 = vmatpush3.bf16.msra.mxu0 (!%p143_p9), %v1649_v6  ;;  %v1658_v15 = vld [vmem:[%s2252_s1 + $0x98] sm:$0xff] (!%p143_p9)   ;;  %v1662_v19 = vld [vmem:[%s2252_s1 + $0xa0] sm:$0xff] (!%p143_p9)   ;;  %v1666_v23 = vld [vmem:[%s2252_s1 + $0xa8] sm:$0xff] (!%p143_p9)  }
  0x15   : > { %1494 = vmatpush3.bf16.msra.mxu1 %v1650_v7  ;;  %1473 = vmatprep.subr.bf16.mxu0 %v1651_v8  ;;  %s2262_s9 = smov (!%p168_p10, %s1352_s9), 7  ;;  %v1667_v24 = vld [vmem:[%s2252_s1 + $0x70] sm:$0xff]   ;;  %v1671_v28 = vld [vmem:[%s2252_s1 + $0x78] sm:$0xff]   ;;  %v1681_v36 = vld [vmem:[%s2252_s1 + $0x140] sm:$0xff]  }
  0x16   : > { %1495 = vmatprep.subr.bf16.mxu1 %v1652_v9  ;;  %v1668_v25 = vld [vmem:[%s2252_s1 + $0xf0] sm:$0xff]   ;;  %s1601_s24 = smul.u32 48, %s2262_s9  ;;  %v1672_v29 = vld [vmem:[%s2252_s1 + $0xf8] sm:$0xff]   ;;  %v1682_v37 = vld [vmem:[%s2252_s1 + $0x1c0] sm:$0xff]  }
  0x17   : > { %v1669_v26 = vld [vmem:[%s2252_s1 + $0x30] sm:$0xff]   ;;  %v1673_v30 = vld [vmem:[%s2252_s1 + $0x38] sm:$0xff]   ;;  %v1683_v38 = vld [vmem:[%s2252_s1 + $0x100] sm:$0xff]  }
  0x18   : > { %1474 = vmatpush3.bf16.msra.mxu0 %v1653_v10  ;;  %v1670_v27 = vld [vmem:[%s2252_s1 + $0xb0] sm:$0xff]   ;;  %s1986_s7 = scalar_lea.vmem %s2251_s0, %s1601_s24  ;;  %v1674_v31 = vld [vmem:[%s2252_s1 + $0xb8] sm:$0xff]   ;;  %v1684_v39 = vld [vmem:[%s2252_s1 + $0x180] sm:$0xff]  }
  0x19   : > { %1496 = vmatpush3.bf16.msra.mxu1 %v1654_v11  ;;  %1475 = vmatprep.subr.bf16.mxu0 %v1655_v12  ;;  %v1675_v32 = vld [vmem:[%s1986_s7] ss:$48 sps:$4 sm:$0xff]   ;;  %v1677_v33 = vld [vmem:[%s1986_s7 + $0x4] ss:$48 sps:$4 sm:$0xff]   ;;  %v1678_v34 = vld [vmem:[%s1986_s7 + $0x8] ss:$48 sps:$4 sm:$0xff]  }
  0x1a   : > { %1497 = vmatprep.subr.bf16.mxu1 %v1656_v13  ;;  %v1680_v35 = vld [vmem:[%s1986_s7 + $0xc] ss:$48 sps:$4 sm:$0xff]   ;;  %1055 = vmatprep.mubr.bf16.mxu0 %v1677_v33  ;;  %v1689_v44 = vld [vmem:[%s2252_s1 + $0x150] sm:$0xff]   ;;  %v1697_v52 = vld [vmem:[%s2252_s1 + $0x160] sm:$0xff]  }
  0x1b   : > { %1096 = vmatprep.mubr.bf16.mxu1 %v1680_v35  ;;  %v1685_v40 = vld [vmem:[%s2252_s1 + $0x148] sm:$0xff]   ;;  %v1690_v45 = vld [vmem:[%s2252_s1 + $0x1d0] sm:$0xff]   ;;  %v1693_v48 = vld [vmem:[%s2252_s1 + $0x158] sm:$0xff]  }
  0x1c   : > { %1476 = vmatpush3.bf16.msra.mxu0 %v1657_v14  ;;  %v1686_v41 = vld [vmem:[%s2252_s1 + $0x1c8] sm:$0xff]   ;;  %v1691_v46 = vld [vmem:[%s2252_s1 + $0x110] sm:$0xff]   ;;  %v1694_v49 = vld [vmem:[%s2252_s1 + $0x1d8] sm:$0xff]  }
  0x1d   : > { %1498 = vmatpush3.bf16.msra.mxu1 %v1658_v15  ;;  %1477 = vmatprep.subr.bf16.mxu0 %v1659_v16  ;;  %v1687_v42 = vld [vmem:[%s2252_s1 + $0x108] sm:$0xff]   ;;  %v1692_v47 = vld [vmem:[%s2252_s1 + $0x190] sm:$0xff]   ;;  %v1695_v50 = vld [vmem:[%s2252_s1 + $0x118] sm:$0xff]  }
  0x1e   : > { %1499 = vmatprep.subr.bf16.mxu1 %v1660_v17  ;;  %v1688_v43 = vld [vmem:[%s2252_s1 + $0x188] sm:$0xff]   ;;  %v1696_v51 = vld [vmem:[%s2252_s1 + $0x198] sm:$0xff]   ;;  %v1698_v53 = vld [vmem:[%s2252_s1 + $0x1e0] sm:$0xff]  }
  0x1f   : > { %v1699_v54 = vld [vmem:[%s2252_s1 + $0x120] sm:$0xff]   ;;  %v1701_v56 = vld [vmem:[%s2252_s1 + $0x168] sm:$0xff]   ;;  %v1705_v60 = vld [vmem:[%s2252_s1 + $0x170] sm:$0xff]  }
  0x20   : > { %1478 = vmatpush3.bf16.msra.mxu0 %v1661_v18  ;;  %v1700_v55 = vld [vmem:[%s2252_s1 + $0x1a0] sm:$0xff]   ;;  %v1702_v57 = vld [vmem:[%s2252_s1 + $0x1e8] sm:$0xff]   ;;  %v1706_v61 = vld [vmem:[%s2252_s1 + $0x1f0] sm:$0xff]  }
  0x21   : > { %1500 = vmatpush3.bf16.msra.mxu1 %v1662_v19  ;;  %1479 = vmatprep.subr.bf16.mxu0 %v1663_v20  ;;  %v1703_v58 = vld [vmem:[%s2252_s1 + $0x128] sm:$0xff]   ;;  %v1707_v62 = vld [vmem:[%s2252_s1 + $0x130] sm:$0xff]   ;;  %v1709_v0 = vld [vmem:[%s2252_s1 + $0x178] sm:$0xff]  }
  0x22   : > { %1501 = vmatprep.subr.bf16.mxu1 %v1664_v21  ;;  %v1704_v59 = vld [vmem:[%s2252_s1 + $0x1a8] sm:$0xff]   ;;  %v1708_v63 = vld [vmem:[%s2252_s1 + $0x1b0] sm:$0xff]   ;;  %v1710_v1 = vld [vmem:[%s2252_s1 + $0x1f8] sm:$0xff]  }
  0x23   : > { %v1711_v2 = vld [vmem:[%s2252_s1 + $0x138] sm:$0xff]   ;;  %v1713_v4 = vld [vmem:[%s1986_s7 + $0x10] ss:$48 sps:$4 sm:$0xff]   ;;  %v1715_v5 = vld [vmem:[%s1986_s7 + $0x14] ss:$48 sps:$4 sm:$0xff]  }
  0x24   : > { %1480 = vmatpush3.bf16.msra.mxu0 %v1665_v22  ;;  %v1712_v3 = vld [vmem:[%s2252_s1 + $0x1b8] sm:$0xff]   ;;  %v1719_v8 = vld [vmem:[%s2252_s1 + $0x240] sm:$0xff]   ;;  %v1723_v12 = vld [vmem:[%s2252_s1 + $0x248] sm:$0xff]  }
  0x25   : > { %1502 = vmatpush3.bf16.msra.mxu1 %v1666_v23  ;;  %1481 = vmatprep.subr.bf16.mxu0 %v1667_v24  ;;  %v1716_v6 = vld [vmem:[%s1986_s7 + $0x18] ss:$48 sps:$4 sm:$0xff]   ;;  %v1718_v7 = vld [vmem:[%s1986_s7 + $0x1c] ss:$48 sps:$4 sm:$0xff]   ;;  %v1720_v9 = vld [vmem:[%s2252_s1 + $0x2c0] sm:$0xff]  }
  0x26   : > { %1503 = vmatprep.subr.bf16.mxu1 %v1668_v25  ;;  %v1721_v10 = vld [vmem:[%s2252_s1 + $0x200] sm:$0xff]   ;;  %v1724_v13 = vld [vmem:[%s2252_s1 + $0x2c8] sm:$0xff]   ;;  %v1727_v16 = vld [vmem:[%s2252_s1 + $0x250] sm:$0xff]  }
  0x27   : > { %v1722_v11 = vld [vmem:[%s2252_s1 + $0x280] sm:$0xff]   ;;  %v1725_v14 = vld [vmem:[%s2252_s1 + $0x208] sm:$0xff]   ;;  %v1728_v17 = vld [vmem:[%s2252_s1 + $0x2d0] sm:$0xff]  }
  0x28   : > { %1482 = vmatpush3.bf16.msra.mxu0 %v1669_v26  ;;  %v1726_v15 = vld [vmem:[%s2252_s1 + $0x288] sm:$0xff]   ;;  %v1729_v18 = vld [vmem:[%s2252_s1 + $0x210] sm:$0xff]   ;;  %v1731_v20 = vld [vmem:[%s2252_s1 + $0x258] sm:$0xff]  }
  0x29   : > { %1504 = vmatpush3.bf16.msra.mxu1 %v1670_v27  ;;  %1483 = vmatprep.subr.bf16.mxu0 %v1671_v28  ;;  %v1730_v19 = vld [vmem:[%s2252_s1 + $0x290] sm:$0xff]   ;;  %v1732_v21 = vld [vmem:[%s2252_s1 + $0x2d8] sm:$0xff]   ;;  %v1735_v24 = vld [vmem:[%s2252_s1 + $0x260] sm:$0xff]  }
  0x2a   : > { %1505 = vmatprep.subr.bf16.mxu1 %v1672_v29  ;;  %v1733_v22 = vld [vmem:[%s2252_s1 + $0x218] sm:$0xff]   ;;  %v1736_v25 = vld [vmem:[%s2252_s1 + $0x2e0] sm:$0xff]   ;;  %v1739_v28 = vld [vmem:[%s2252_s1 + $0x268] sm:$0xff]  }
  0x2b   : > { %v1734_v23 = vld [vmem:[%s2252_s1 + $0x298] sm:$0xff]   ;;  %v1737_v26 = vld [vmem:[%s2252_s1 + $0x220] sm:$0xff]   ;;  %v1740_v29 = vld [vmem:[%s2252_s1 + $0x2e8] sm:$0xff]  }
  0x2c   : > { %1484 = vmatpush3.bf16.msra.mxu0 %v1673_v30  ;;  %v1738_v27 = vld [vmem:[%s2252_s1 + $0x2a0] sm:$0xff]   ;;  %v1741_v30 = vld [vmem:[%s2252_s1 + $0x228] sm:$0xff]   ;;  %v1744_v33 = vld [vmem:[%s2252_s1 + $0x2f0] sm:$0xff]  }
  0x2d   : > { %1506 = vmatpush3.bf16.msra.mxu1 %v1674_v31  ;;  %1513 = vmatprep.subr.bf16.mxu0 %v1681_v36  ;;  %v1742_v31 = vld [vmem:[%s2252_s1 + $0x2a8] sm:$0xff]   ;;  %v1746_v35 = vld [vmem:[%s2252_s1 + $0x2b0] sm:$0xff]   ;;  %v1747_v36 = vld [vmem:[%s2252_s1 + $0x278] sm:$0xff]  }
  0x2e   : > { %1535 = vmatprep.subr.bf16.mxu1 %v1682_v37  ;;  %v1748_v37 = vld [vmem:[%s2252_s1 + $0x2f8] sm:$0xff]  }
  0x2f   : > { %1056 = vmatmul.mubr.bf16.vlgmr.msra.gmra.mrb[0].mxu0 %v1675_v32  ;;  %v1743_v32 = vld [vmem:[%s2252_s1 + $0x270] sm:$0xff]  }
  0x30   : > { %1097 = vmatmul.mubr.bf16.vlgmr.msra.gmra.mrb[0].mxu1 %v1678_v34  ;;  %1514 = vmatpush3.bf16.msra.mxu0 %v1683_v38  ;;  %v1745_v34 = vld [vmem:[%s2252_s1 + $0x230] sm:$0xff]   ;;  %v1749_v38 = vld [vmem:[%s2252_s1 + $0x238] sm:$0xff]  }
  0x31   : > { %1536 = vmatpush3.bf16.msra.mxu1 %v1684_v39  ;;  %1515 = vmatprep.subr.bf16.mxu0 %v1685_v40  ;;  %v1750_v39 = vld [vmem:[%s2252_s1 + $0x2b8] sm:$0xff]   ;;  %v1751_v40 = vld [vmem:[%s1986_s7 + $0x20] ss:$48 sps:$4 sm:$0xff]  }
  0x32   : > { %1537 = vmatprep.subr.bf16.mxu1 %v1686_v41  ;;  %1137 = vmatprep.mubr.bf16.mxu0 %v1715_v5  ;;  %v1753_v41 = vld [vmem:[%s1986_s7 + $0x24] ss:$48 sps:$4 sm:$0xff]  }
  0x33   : > { %1178 = vmatprep.mubr.bf16.mxu1 %v1718_v7 }
  0x34   : > { %1516 = vmatpush3.bf16.msra.mxu0 %v1687_v42  ;;  %v1754_v42 = vld [vmem:[%s1986_s7 + $0x28] ss:$48 sps:$4 sm:$0xff]  }
  0x35   : > { %1538 = vmatpush3.bf16.msra.mxu1 %v1688_v43  ;;  %1517 = vmatprep.subr.bf16.mxu0 %v1689_v44  ;;  %v1756_v43 = vld [vmem:[%s1986_s7 + $0x2c] ss:$48 sps:$4 sm:$0xff]   ;;  %s164_s7 = sand.u32 1, %s1811_s13  }
  0x36   : > { %1539 = vmatprep.subr.bf16.mxu1 %v1690_v45  ;;  %s1351_s9 = sshll.u32 %s164_s7, 4  ;;  %s2210_s20 = scalar_lea.sflag [#allocation3], %s164_s7 }
  0x37   : > { %s166_s6 = scalar_lea.vmem [#allocation2], %s1351_s9 }
  0x38   : > { %1518 = vmatpush3.bf16.msra.mxu0 %v1691_v46  ;;  %v1354_v46 = vld [vmem:[%s2253_s2] ss:$0 sm:$0xff]  ;;  %s1285_s8 = sshll.u32 %s166_s6, 4  ;;  %s2203_s8 = int_to_ptr.vmem [resolvable:$true] %s1285_s8 }
  0x39   : > { %1540 = vmatpush3.bf16.msra.mxu1 %v1692_v47  ;;  %1519 = vmatprep.subr.bf16.mxu0 %v1693_v48  ;;  %s1757_s24 = scalar_lea.vmem %s2203_s8, 256  ;;  %p1764_p0 = scmp.lt.s32.totalorder %s2203_s8, %s1762_s25 }
  0x3a   : > { %1541 = vmatprep.subr.bf16.mxu1 %v1694_v49  ;;  %p1758_p11 = scmp.ne.s32.totalorder %s2203_s8, %s1757_s24  ;;  %p1765_p1 = scmp.lt.s32.totalorder %s1763_s26, %s1757_s24 }
  0x3c   : > { %1520 = vmatpush3.bf16.msra.mxu0 %v1695_v50  ;;  %p1759_p12 = pnand %p1758_p11, %p1882_p5  ;;  %p1766_p2 = por %p1765_p1, %p1764_p0 }
  0x3d   : > { %1542 = vmatpush3.bf16.msra.mxu1 %v1696_v51  ;;  %1521 = vmatprep.subr.bf16.mxu0 %v1697_v52 }
  0x3e   : > { %1543 = vmatprep.subr.bf16.mxu1 %v1698_v53  ;;  %p1760_p13 = pneg %p1759_p12 }
  0x40   : > { %1522 = vmatpush3.bf16.msra.mxu0 %v1699_v54  ;;  %p1767_p3 = pnand %p1766_p2, %p1760_p13 }
  0x41   : > { %1544 = vmatpush3.bf16.msra.mxu1 %v1700_v55  ;;  %1523 = vmatprep.subr.bf16.mxu0 %v1701_v56 }
  0x42   : > { %1545 = vmatprep.subr.bf16.mxu1 %v1702_v57 }
  0x44   : > { %1524 = vmatpush3.bf16.msra.mxu0 %v1703_v58 }
  0x45   : > { %1546 = vmatpush3.bf16.msra.mxu1 %v1704_v59  ;;  %1525 = vmatprep.subr.bf16.mxu0 %v1705_v60 }
  0x46   : > { %1547 = vmatprep.subr.bf16.mxu1 %v1706_v61 }
  0x48   : > { %1526 = vmatpush3.bf16.msra.mxu0 %v1707_v62 }
  0x49   : > { %1548 = vmatpush3.bf16.msra.mxu1 %v1708_v63  ;;  %1527 = vmatprep.subr.bf16.mxu0 %v1709_v0 }
  0x4a   : > { %1549 = vmatprep.subr.bf16.mxu1 %v1710_v1 }
  0x4c   : > { %1528 = vmatpush3.bf16.msra.mxu0 %v1711_v2 }
  0x4d   : > { %1550 = vmatpush3.bf16.msra.mxu1 %v1712_v3  ;;  %1557 = vmatprep.subr.bf16.mxu0 %v1719_v8 }
  0x4e   : > { %1579 = vmatprep.subr.bf16.mxu1 %v1720_v9 }
  0x4f   : > { %1138 = vmatmul.mubr.bf16.vlgmr.msra.gmra.mrb[4].mxu0 %v1713_v4 }
  0x50   : > { %1179 = vmatmul.mubr.bf16.vlgmr.msra.gmra.mrb[4].mxu1 %v1716_v6  ;;  %1558 = vmatpush3.bf16.msra.mxu0 %v1721_v10 }
  0x51   : > { %1580 = vmatpush3.bf16.msra.mxu1 %v1722_v11  ;;  %1559 = vmatprep.subr.bf16.mxu0 %v1723_v12 }
  0x52   : > { %1581 = vmatprep.subr.bf16.mxu1 %v1724_v13  ;;  %1219 = vmatprep.mubr.bf16.mxu0 %v1753_v41 }
  0x53   : > { %1260 = vmatprep.mubr.bf16.mxu1 %v1756_v43 }
  0x54   : > { %1560 = vmatpush3.bf16.msra.mxu0 %v1725_v14 }
  0x55   : > { %1582 = vmatpush3.bf16.msra.mxu1 %v1726_v15  ;;  %1561 = vmatprep.subr.bf16.mxu0 %v1727_v16 }
  0x56   : > { %1583 = vmatprep.subr.bf16.mxu1 %v1728_v17 }
  0x58   : > { %1562 = vmatpush3.bf16.msra.mxu0 %v1729_v18 }
  0x59   : > { %1584 = vmatpush3.bf16.msra.mxu1 %v1730_v19  ;;  %1563 = vmatprep.subr.bf16.mxu0 %v1731_v20 }
  0x5a   : > { %1585 = vmatprep.subr.bf16.mxu1 %v1732_v21 }
  0x5c   : > { %1564 = vmatpush3.bf16.msra.mxu0 %v1733_v22 }
  0x5d   : > { %1586 = vmatpush3.bf16.msra.mxu1 %v1734_v23  ;;  %1565 = vmatprep.subr.bf16.mxu0 %v1735_v24 }
  0x5e   : > { %1587 = vmatprep.subr.bf16.mxu1 %v1736_v25 }
  0x60   : > { %1566 = vmatpush3.bf16.msra.mxu0 %v1737_v26 }
  0x61   : > { %1588 = vmatpush3.bf16.msra.mxu1 %v1738_v27  ;;  %1567 = vmatprep.subr.bf16.mxu0 %v1739_v28 }
  0x62   : > { %1589 = vmatprep.subr.bf16.mxu1 %v1740_v29 }
  0x64   : > { %1568 = vmatpush3.bf16.msra.mxu0 %v1741_v30 }
  0x65   : > { %1590 = vmatpush3.bf16.msra.mxu1 %v1742_v31  ;;  %1569 = vmatprep.subr.bf16.mxu0 %v1743_v32 }
  0x66   : > { %1591 = vmatprep.subr.bf16.mxu1 %v1744_v33 }
  0x68   : > { %1570 = vmatpush3.bf16.msra.mxu0 %v1745_v34 }
  0x69   : > { %1592 = vmatpush3.bf16.msra.mxu1 %v1746_v35  ;;  %1571 = vmatprep.subr.bf16.mxu0 %v1747_v36 }
  0x6a   : > { %1593 = vmatprep.subr.bf16.mxu1 %v1748_v37 }
  0x6c   : > { %1572 = vmatpush3.bf16.msra.mxu0 %v1749_v38 }
  0x6d   : > { %1594 = vmatpush3.bf16.msra.mxu1 %v1750_v39 }
  0x6f   : > { %1220 = vmatmul.mubr.bf16.vlgmr.msra.gmra.mrb[8].mxu0 %v1751_v40 }
  0x70   : > { %1261 = vmatmul.mubr.bf16.vlgmr.msra.gmra.mrb[8].mxu1 %v1754_v42 }
 0x102   : > { %v1485_v44 = vpop.f32.mrb[0].mxu0 }
 0x103   : > { %v1507_v45 = vpop.f32.mrb[0].mxu1  ;;  %v1486_v47 = vpop.f32.mrb[1].mxu0 }
 0x104   : > { %v1487_v48 = vadd.f32 %v1486_v47, %v1485_v44  ;;  %v1508_v49 = vpop.f32.mrb[1].mxu1  ;;  %v1488_v50 = vpop.f32.mrb[2].mxu0 }
 0x105   : > { %v1509_v51 = vadd.f32 %v1508_v49, %v1507_v45  ;;  %v1510_v52 = vpop.f32.mrb[2].mxu1  ;;  %v1489_v53 = vpop.f32.mrb[3].mxu0 }
 0x106   : > { %v1058_v54 = vadd.f32 %v1487_v48, %v1354_v46  ;;  %v1490_v55 = vadd.f32 %v1489_v53, %v1488_v50  ;;  %v1511_v56 = vpop.f32.mrb[3].mxu1 }
 0x107   : > { %v1512_v57 = vadd.f32 %v1511_v56, %v1510_v52 }
 0x108   : > { %v1099_v58 = vadd.f32 %v1509_v51, %v1058_v54  ;;  %v1061_v59 = vadd.f32 %v1490_v55, %v1354_v46 }
 0x10a   : > { %v1102_v60 = vadd.f32 %v1512_v57, %v1061_v59 }
 0x122   : > { %v1529_v61 = vpop.f32.mrb[4].mxu0 }
 0x123   : > { %v1530_v62 = vpop.f32.mrb[5].mxu0  ;;  %v1551_v63 = vpop.f32.mrb[4].mxu1 }
 0x124   : > { %v1531_v0 = vadd.f32 %v1530_v62, %v1529_v61  ;;  %v1532_v1 = vpop.f32.mrb[6].mxu0  ;;  %v1552_v2 = vpop.f32.mrb[5].mxu1 }
 0x125   : > { %v1533_v3 = vpop.f32.mrb[7].mxu0  ;;  %v1553_v5 = vadd.f32 %v1552_v2, %v1551_v63  ;;  %v1554_v6 = vpop.f32.mrb[6].mxu1 }
 0x126   : > { %v1140_v4 = vadd.f32 %v1531_v0, %v1099_v58  ;;  %v1534_v7 = vadd.f32 %v1533_v3, %v1532_v1  ;;  %v1555_v8 = vpop.f32.mrb[7].mxu1 }
 0x127   : > { %v1556_v11 = vadd.f32 %v1555_v8, %v1554_v6 }
 0x128   : > { %v1181_v9 = vadd.f32 %v1553_v5, %v1140_v4  ;;  %v1143_v10 = vadd.f32 %v1534_v7, %v1102_v60 }
 0x12a   : > { %v1184_v12 = vadd.f32 %v1556_v11, %v1143_v10 }
 0x142   : > { %v1573_v13 = vpop.f32.mrb[8].mxu0 }
 0x143   : > { %v1595_v14 = vpop.f32.mrb[8].mxu1  ;;  %v1574_v15 = vpop.f32.mrb[9].mxu0 }
 0x144   : > { %v1575_v16 = vadd.f32 %v1574_v15, %v1573_v13  ;;  %v1596_v17 = vpop.f32.mrb[9].mxu1  ;;  %v1576_v18 = vpop.f32.mrb[10].mxu0 }
 0x145   : > { %v1597_v19 = vadd.f32 %v1596_v17, %v1595_v14  ;;  %v1598_v20 = vpop.f32.mrb[10].mxu1  ;;  %v1577_v21 = vpop.f32.mrb[11].mxu0 }
 0x146   : > { %v1222_v22 = vadd.f32 %v1575_v16, %v1181_v9  ;;  %v1578_v23 = vadd.f32 %v1577_v21, %v1576_v18  ;;  %v1599_v24 = vpop.f32.mrb[11].mxu1 }
 0x147   : > { %v1600_v25 = vadd.f32 %v1599_v24, %v1598_v20 }
 0x148   : > { %v1263_v26 = vadd.f32 %v1597_v19, %v1222_v22  ;;  %v1225_v27 = vadd.f32 %v1578_v23, %v1184_v12 }
 0x14a   : > { %1269 = vst [vmem:[%s166_s6] sm:$0xff] %v1263_v26  ;;  %v1266_v28 = vadd.f32 %v1600_v25, %v1225_v27 }
 0x14c   : > { %1270 = vst [vmem:[%s166_s6 + $0x8] sm:$0xff] %v1266_v28 }
 0x14d   : > { %1770 = shalt.err (!%p1767_p3)
}
 0x14e   : > { %s1771_s27 = scalar_lea.hbm %s2208_s19, 256  ;;  %s1775_s30 = scalar_lea.hbm %s2254_s3, 1024 }
 0x14f   : > { %p1772_p4 = scmp.ne.s32.totalorder %s2208_s19, %s1771_s27  ;;  %p1776_p9 = scmp.lt.u32.totalorder %s2208_s19, %s2254_s3 }
 0x150   : > { %p1777_p10 = scmp.lt.u32.totalorder %s1775_s30, %s1771_s27  ;;  %p1779_p12 = scmp.lt.u32.totalorder %s1771_s27, %s2208_s19 }
 0x151   : > { %p1773_p7 = pnand %p1772_p4, %p1882_p5 }
 0x152   : > { %p1778_p11 = por %p1777_p10, %p1776_p9 }
 0x153   : > { %p1774_p8 = pneg %p1773_p7 }
 0x154   : > { %p1780_p13 = por %p1779_p12, %p1778_p11 }
 0x156   : > { %p1781_p0 = pnand %p1780_p13, %p1774_p8 }
 0x158   : > { %1784 = shalt.err (!%p1781_p0)
}
 0x159   : > { %s1822_s7 = smov 128   ;;  %s1823_s9 = smov 8  }
 0x15a   : > { %1602 = dma.vmem_to_hbm [thread:$0]  (%p1882_p5), %s2203_s8, 256, %s2208_s19, %s2210_s20, %s1822_s7, %s1822_s7, %s1823_s9  }
 0x15b PF: > { %p1608_p1 = scmp.ge.s32.totalorder %s1819_s15, 2  ;;  %s1300_s6 = sand.u32 1, %s1807_s12  }
 0x15c   : > { %s1301_s10 = scalar_lea.sflag [#allocation3], %s1300_s6 }
 0x15d   : > { %p1605_p2 = pnand %p1608_p1, %p1886_p6 }
 0x15f   : > { %1802 = dma.done.wait (!%p1605_p2), %s1301_s10, 256  }
 0x160   : > { %1804 = vsyncadd (!%p1605_p2), %s1301_s10, 4294967040  ;;  %p13_p3 = scmp.ge.s32.totalorder %s1869_s18, 6   ;;  %s2257_s12 = smov %s1811_s13 }
 0x161   : > { %s2258_s13 = smov %s1815_s14  ;;  %s2259_s14 = smov %s1880_s21 }
 0x162   : > { %s2260_s15 = smov %s1869_s18  ;;  %15 = sbr.rel (!%p13_p3) target bundleno = 3 (0x3), region = 67 }
 0x169   :  { %1306 = vsyncpa [#allocation3], 1 }
 0x16a   :  { %1308 = vsyncpa [#allocation3 + $0x1], 1 }

</bundles_post_ra>
